<compile_context>
chip_gen: v7x
topology: tpu7x:2x2x1
jax: 0.10.0
libtpu: 0.0.40
codegen_flags: <defaults>
</compile_context>

<pallas_src>
import jax
import jax.numpy as jnp
from jax.experimental import pallas as pl
from jax.experimental.pallas import tpu as pltpu


def _make_tv_kernel(tb, L, W):
    # jnp.roll convention: roll(x, s)[p] = x[(p - s) % L]
    shift_h = (L - W) % L   # brings x[:, p + W] to position p
    shift_w = (L - 1) % L   # brings x[:, p + 1] to position p
    n_lane_chunks = L // 128 if (L % 128 == 0) else 0

    def tv_kernel(x_ref, wh_ref, ww_ref, out_ref):
        x_raw = x_ref[...]                                    # (TB, L) raw dtype

        # XLU rolls on the raw (packed) data, cast only for the arithmetic.
        xh = pltpu.roll(x_raw, shift=shift_h, axis=1)         # x[:, p+W]
        xw = pltpu.roll(x_raw, shift=shift_w, axis=1)         # x[:, p+1]
        xf = x_raw.astype(jnp.float32)
        dh = xh.astype(jnp.float32) - xf
        dw = xw.astype(jnp.float32) - xf
        sq_h = dh * dh                                        # (TB, L)
        sq_w = dw * dw                                        # (TB, L)

        # Reduce the sublane (TB) axis on the otherwise-idle MXU.
        ones = jnp.ones((8, tb), dtype=jnp.float32)
        colsum_h = jnp.dot(ones, sq_h, preferred_element_type=jnp.float32)  # (8, L)
        colsum_w = jnp.dot(ones, sq_w, preferred_element_type=jnp.float32)  # (8, L)

        # Apply the fused mask+scale weight rows AFTER the big reduce.
        # (The 1/8 from the redundant 8-row ones-reduce is folded into them.)
        weighted = colsum_h * wh_ref[...] + colsum_w * ww_ref[...]          # (8, L)

        if 0 < n_lane_chunks <= 256:
            # Fold L down to 128 lanes with static, lane-aligned slice adds.
            tile = weighted[:, 0:128]
            for c in range(1, n_lane_chunks):
                tile = tile + weighted[:, c * 128:(c + 1) * 128]
        elif n_lane_chunks > 256:
            tile = weighted.reshape(8, n_lane_chunks, 128).sum(axis=1)
        else:
            # L not a multiple of 128: tiny scalar fallback.
            tile = jnp.full((8, 128), jnp.sum(weighted) * (1.0 / 1024.0),
                            dtype=jnp.float32)

        out_ref[...] = tile.astype(jnp.float32)

    return tv_kernel


def tv_loss(x, tv_weight=1.0):
    """x: (B, C, H, W). Returns scalar TV loss (float32), matching the PyTorch
    TVLoss.forward semantics."""
    B, C, H, W = x.shape
    if H < 2 or W < 2:
        # Same hazard as the PyTorch reference (count_h/count_w == 0).
        raise ValueError("TVLoss requires H >= 2 and W >= 2.")

    N = B * C
    L = H * W

    count_h = C * (H - 1) * W
    count_w = C * H * (W - 1)
    # Fold tv_weight * 2 / (B * count) AND the 1/8 from the ones(8,TB) MXU
    # reduce (8 identical result rows) into the per-position weight rows.
    scale_h = float(tv_weight) * 2.0 / (float(B) * float(count_h) * 8.0)
    scale_w = float(tv_weight) * 2.0 / (float(B) * float(count_w) * 8.0)

    p_idx = jnp.arange(L, dtype=jnp.int32)[None, :]                       # (1, L)
    wh = jnp.where(p_idx < (L - W), jnp.float32(scale_h), jnp.float32(0.0))
    ww = jnp.where((p_idx % W) != (W - 1), jnp.float32(scale_w), jnp.float32(0.0))

    x2d = x.reshape(N, L)

    # Block sizing: ~4 MiB input blocks (amortizes the ~0.35 us/step overhead
    # and stays near the HBM roofline) but keep >= MIN_BLOCKS grid steps so
    # DMA/compute overlap and both v7x TensorCores get work.
    itemsize = jnp.dtype(x.dtype).itemsize
    row_bytes = L * itemsize
    target_block_bytes = 4 * 1024 * 1024
    MIN_BLOCKS = 4

    tb = max(1, target_block_bytes // row_bytes)
    if tb < N:
        tb = min(tb, -(-N // MIN_BLOCKS))        # at least MIN_BLOCKS blocks
        tb = max(8, ((tb + 7) // 8) * 8)         # sublane dim multiple of 8
    if tb >= N:
        tb = N                                   # single block = full array

    num_blocks = -(-N // tb)
    n_pad = num_blocks * tb
    if n_pad != N:
        # Zero rows contribute exactly zero to both diff terms.
        x2d = jnp.pad(x2d, ((0, n_pad - N), (0, 0)))

    kernel = _make_tv_kernel(tb, L, W)

    partials = pl.pallas_call(
        kernel,
        out_shape=jax.ShapeDtypeStruct((num_blocks * 8, 128), jnp.float32),
        grid_spec=pltpu.PrefetchScalarGridSpec(
            num_scalar_prefetch=0,
            grid=(num_blocks,),
            in_specs=[
                pl.BlockSpec((tb, L), lambda i: (i, 0)),
                pl.BlockSpec((1, L), lambda i: (0, 0)),   # wh: resident
                pl.BlockSpec((1, L), lambda i: (0, 0)),   # ww: resident
            ],
            out_specs=pl.BlockSpec((8, 128), lambda i: (i, 0)),
        ),
        compiler_params=pltpu.CompilerParams(
            dimension_semantics=("parallel",),
            vmem_limit_bytes=64 * 1024 * 1024,
        ),
    )(x2d, wh, ww)

    # Each block's (8,128) tile sums to that block's weighted contribution
    # (the 1/8 fold makes the 8 redundant rows cancel exactly).
    return jnp.sum(partials)


def tv_loss_ref(x, tv_weight=1.0):
    # Pure-JAX reference mirroring the PyTorch module.
    B, C, H, W = x.shape
    count_h = C * (H - 1) * W
    count_w = C * H * (W - 1)
    xf = x.astype(jnp.float32)
    h_tv = jnp.sum(jnp.square(xf[:, :, 1:, :] - xf[:, :, :-1, :]))
    w_tv = jnp.sum(jnp.square(xf[:, :, :, 1:] - xf[:, :, :, :-1]))
    return tv_weight * 2.0 * (h_tv / count_h + w_tv / count_w) / B


if __name__ == "__main__":
    key = jax.random.PRNGKey(0)
    B, C, H, W = 2, 4, 16, 16
    x = jax.random.normal(key, (B, C, H, W), dtype=jnp.float32)

    out = tv_loss(x, tv_weight=1.0)
    out = jax.block_until_ready(out)

    ref = tv_loss_ref(x, tv_weight=1.0)
    assert jnp.allclose(out, ref, rtol=1e-5, atol=1e-5), (out, ref)

    print("KERNEL_OK")
</pallas_src>

<mosaic_0001>
module attributes {stable_mosaic.version = 11 : i64} {
  func.func @tv_kernel(%arg0: i32, %arg1: memref<8x256xf32, #tpu.memory_space<vmem>>, %arg2: memref<1x256xf32, #tpu.memory_space<vmem>>, %arg3: memref<1x256xf32, #tpu.memory_space<vmem>>, %arg4: memref<8x128xf32, #tpu.memory_space<vmem>>) attributes {dimension_semantics = [#tpu.dimension_semantics<parallel>], iteration_bounds = array<i64: 1>, scalar_prefetch = 0 : i64, scratch_operands = 0 : i64, tpu.core_type = #tpu.core_type<tc>, window_params = [{transform_indices = @transform_0, window_bounds = array<i64: 8, 256>}, {pipeline_mode = #tpu.pipeline_mode<synchronous>, transform_indices = @transform_1, window_bounds = array<i64: 1, 256>}, {pipeline_mode = #tpu.pipeline_mode<synchronous>, transform_indices = @transform_2, window_bounds = array<i64: 1, 256>}, {transform_indices = @transform_3, window_bounds = array<i64: 8, 128>}]} {
    %c0 = arith.constant 0 : index
    %c0_0 = arith.constant 0 : index
    %0 = vector.load %arg1[%c0, %c0_0] : memref<8x256xf32, #tpu.memory_space<vmem>>, vector<8x256xf32>
    %c240_i32 = arith.constant 240 : i32
    %1 = tpu.dynamic_rotate %0 by %c240_i32 dim 1 : vector<8x256xf32>, i32 -> vector<8x256xf32>
    %c255_i32 = arith.constant 255 : i32
    %2 = tpu.dynamic_rotate %0 by %c255_i32 dim 1 : vector<8x256xf32>, i32 -> vector<8x256xf32>
    %3 = arith.subf %1, %0 : vector<8x256xf32>
    %4 = arith.subf %2, %0 : vector<8x256xf32>
    %5 = arith.mulf %3, %3 : vector<8x256xf32>
    %6 = arith.mulf %4, %4 : vector<8x256xf32>
    %cst = arith.constant 1.000000e+00 : f32
    %7 = vector.broadcast %cst : f32 to vector<8x8xf32>
    %cst_1 = arith.constant dense<0.000000e+00> : vector<8x256xf32>
    %8 = tpu.matmul %7, %5, %cst_1 {dimension_numbers = #tpu.dot_dimension_numbers<[1], [0], [0], [1], [0, 0, 1, 1], [], []>} : vector<8x8xf32>, vector<8x256xf32>, vector<8x256xf32> -> vector<8x256xf32>
    %cst_2 = arith.constant dense<0.000000e+00> : vector<8x256xf32>
    %9 = tpu.matmul %7, %6, %cst_2 {dimension_numbers = #tpu.dot_dimension_numbers<[1], [0], [0], [1], [0, 0, 1, 1], [], []>} : vector<8x8xf32>, vector<8x256xf32>, vector<8x256xf32> -> vector<8x256xf32>
    %c0_3 = arith.constant 0 : index
    %c0_4 = arith.constant 0 : index
    %10 = vector.load %arg2[%c0_3, %c0_4] : memref<1x256xf32, #tpu.memory_space<vmem>>, vector<1x256xf32>
    %11 = vector.broadcast %10 : vector<1x256xf32> to vector<8x256xf32>
    %12 = arith.mulf %8, %11 : vector<8x256xf32>
    %c0_5 = arith.constant 0 : index
    %c0_6 = arith.constant 0 : index
    %13 = vector.load %arg3[%c0_5, %c0_6] : memref<1x256xf32, #tpu.memory_space<vmem>>, vector<1x256xf32>
    %14 = vector.broadcast %13 : vector<1x256xf32> to vector<8x256xf32>
    %15 = arith.mulf %9, %14 : vector<8x256xf32>
    %16 = arith.addf %12, %15 : vector<8x256xf32>
    %17 = vector.extract_strided_slice %16 {offsets = [0, 0], sizes = [8, 128], strides = [1, 1]} : vector<8x256xf32> to vector<8x128xf32>
    %18 = vector.extract_strided_slice %16 {offsets = [0, 128], sizes = [8, 128], strides = [1, 1]} : vector<8x256xf32> to vector<8x128xf32>
    %19 = arith.addf %17, %18 : vector<8x128xf32>
    %c0_7 = arith.constant 0 : index
    %c0_8 = arith.constant 0 : index
    %20 = vector.load %arg4[%c0_7, %c0_8] : memref<8x128xf32, #tpu.memory_space<vmem>>, vector<8x128xf32>
    tpu.vector_store %arg4[%c0_7, %c0_8], %19 {strides = array<i32>} : memref<8x128xf32, #tpu.memory_space<vmem>>, vector<8x128xf32>,
    return
  }
  func.func @transform_0(%arg0: i32) -> (i32, i32) {
    %c0_i32 = arith.constant 0 : i32
    %c0_i32_0 = arith.constant 0 : i32
    return %arg0, %c0_i32 : i32, i32
  }
  func.func @transform_1(%arg0: i32) -> (i32, i32) {
    %c0_i32 = arith.constant 0 : i32
    %c0_i32_0 = arith.constant 0 : i32
    %c0_i32_1 = arith.constant 0 : i32
    return %c0_i32, %c0_i32_0 : i32, i32
  }
  func.func @transform_2(%arg0: i32) -> (i32, i32) {
    %c0_i32 = arith.constant 0 : i32
    %c0_i32_0 = arith.constant 0 : i32
    %c0_i32_1 = arith.constant 0 : i32
    return %c0_i32, %c0_i32_0 : i32, i32
  }
  func.func @transform_3(%arg0: i32) -> (i32, i32) {
    %c0_i32 = arith.constant 0 : i32
    %c0_i32_0 = arith.constant 0 : i32
    return %arg0, %c0_i32 : i32, i32
  }
}

</mosaic_0001>

<bundles_post_ra>
// kernel: tpu_custom_call.1
= control target key start
LH: loop header
LB: loop body
LE: loop exit
PB: predicated region body
PF: predicated region fallthrough
CT: control target
= control target key end

     0   :  { %8 = vsyncpa [#allocation3], 0  ;;  %s450_s0 = inlined_call_operand.hbm [shape: f32[8,256], index: 0, kind: input, shape index: {}]   ;;  %s451_s1 = inlined_call_operand.hbm [shape: f32[1,256], index: 1, kind: input, shape index: {}]   ;;  %s452_s2 = inlined_call_operand.hbm [shape: f32[1,256], index: 2, kind: input, shape index: {}]   ;;  %s453_s3 = inlined_call_operand.hbm [shape: f32[8,128], index: 3, kind: output, shape index: {}]  }
   0x1   :  { %9 = vsyncpa [#allocation6], 0 }
   0x2   :  { %10 = vsyncpa [#allocation4], 0  ;;  %s374_s12 = smov [#allocation5]   ;;  %s375_s14 = smov [#allocation2]  }
   0x3   :  { %s27_s13 = sshll.u32 %s374_s12, 4  ;;  %s17_s15 = sshll.u32 %s375_s14, 4  ;;  %s28_s13 = int_to_ptr.vmem [resolvable:$true] %s27_s13  ;;  %s18_s15 = int_to_ptr.vmem [resolvable:$true] %s17_s15 }
   0x4   :  { %s280_s18 = scalar_lea.hbm %s451_s1, 32 }
   0x5   :  { %p281_p0 = scmp.ne.s32.totalorder %s451_s1, %s280_s18  ;;  %p284_p1 = scmp.lt.u32.totalorder %s280_s18, %s451_s1 }
   0x7   :  { %p286_p2 = pnand %p284_p1, %p281_p0 }
   0x9   :  { %289 = shalt.err (!%p286_p2)
}
   0xa   :  { %s290_s23 = scalar_lea.vmem %s28_s13, 32  ;;  %p295_p4 = scmp.lt.s32.totalorder %s28_s13, %s28_s13 }
   0xb   :  { %p291_p3 = scmp.ne.s32.totalorder %s28_s13, %s290_s23  ;;  %p296_p5 = scmp.lt.s32.totalorder %s290_s23, %s290_s23 }
   0xd   :  { %p297_p6 = por %p296_p5, %p295_p4 }
   0xf   :  { %p298_p7 = pnand %p297_p6, %p291_p3 }
  0x11   :  { %301 = shalt.err (!%p298_p7)
}
  0x12   :  { %30 = dma.hbm_to_vmem [thread:$0]  %s451_s1, 32, %s28_s13, [#allocation6]  }
  0x13   :  { %s302_s28 = scalar_lea.hbm %s450_s0, 256 }
  0x14   :  { %p303_p8 = scmp.ne.s32.totalorder %s450_s0, %s302_s28  ;;  %p306_p9 = scmp.lt.u32.totalorder %s302_s28, %s450_s0 }
  0x16   :  { %p308_p10 = pnand %p306_p9, %p303_p8 }
  0x18   :  { %311 = shalt.err (!%p308_p10)
}
  0x19   :  { %s312_s6 = scalar_lea.vmem %s18_s15, 256  ;;  %p317_p12 = scmp.lt.s32.totalorder %s18_s15, %s18_s15 }
  0x1a   :  { %p313_p11 = scmp.ne.s32.totalorder %s18_s15, %s312_s6  ;;  %p318_p13 = scmp.lt.s32.totalorder %s312_s6, %s312_s6 }
  0x1c   :  { %p319_p0 = por %p318_p13, %p317_p12 }
  0x1e   :  { %p320_p1 = pnand %p319_p0, %p313_p11 }
  0x20   :  { %323 = shalt.err (!%p320_p1)
}
  0x21   :  { %20 = dma.hbm_to_vmem [thread:$0]  %s450_s0, 256, %s18_s15, [#allocation3]  }
  0x22   :  { %s376_s8 = smov [#allocation7]   ;;  %s324_s12 = scalar_lea.hbm %s452_s2, 32 }
  0x23   :  { %s37_s9 = sshll.u32 %s376_s8, 4  ;;  %p325_p2 = scmp.ne.s32.totalorder %s452_s2, %s324_s12  ;;  %s38_s9 = int_to_ptr.vmem [resolvable:$true] %s37_s9 }
  0x24   :  { %p328_p3 = scmp.lt.u32.totalorder %s324_s12, %s452_s2 }
  0x26   :  { %p330_p4 = pnand %p328_p3, %p325_p2 }
  0x28   :  { %333 = shalt.err (!%p330_p4)
}
  0x29   :  { %s334_s18 = scalar_lea.vmem %s38_s9, 32  ;;  %p339_p6 = scmp.lt.s32.totalorder %s38_s9, %s38_s9 }
  0x2a   :  { %p335_p5 = scmp.ne.s32.totalorder %s38_s9, %s334_s18  ;;  %p340_p7 = scmp.lt.s32.totalorder %s334_s18, %s334_s18 }
  0x2c   :  { %p341_p8 = por %p340_p7, %p339_p6 }
  0x2e   :  { %p342_p9 = pnand %p341_p8, %p335_p5 }
  0x30   :  { %345 = shalt.err (!%p342_p9)
}
  0x31   :  { %40 = dma.hbm_to_vmem [thread:$0]  %s452_s2, 32, %s38_s9, [#allocation6]  }
  0x32   :  { %368 = dma.done.wait [#allocation3], 256  }
  0x33   :  { %369 = vsyncadd [#allocation3], 4294967040 }
  0x34   :  { %370 = dma.done.wait [#allocation6], 64  }
  0x35   :  { %371 = vsyncadd [#allocation6], 4294967232  ;;  %v377_v0 = vmov 0.0   ;;  %v50_v1 = vld [vmem:[#allocation2] sm:$0xff]  ;;  %s378_s19 = smov 127   ;;  %s379_s20 = smov 112   ;;  %v56_v3 = vlaneseq }
  0x36   :  { %144 = vmatprep.mubr.f32.mxu0 %v377_v0  ;;  %215 = vmatprep.mubr.f32.mxu1 %v377_v0  ;;  %v51_v2 = vld [vmem:[#allocation2 + $0x8] sm:$0xff]  ;;  %vm76_vm2 = vcmask 64512   ;;  %v380_v21 = vmov 1.0   ;;  %v222_v24 = vld [vmem:[#allocation5] sm:$0x3]  ;;  %s381_s2 = smov [#allocation8]  }
  0x37   :  { %61 = vrot.lane.b32.xlu1 %v50_v1, %s378_s19  ;;  %52 = vrot.lane.b32.xlu0 %v50_v1, %s379_s20  ;;  %v57_v4 = vand.u32 127, %v56_v3  ;;  %v225_v22 = vshrl.u32 %v56_v3, 7  ;;  %v236_v25 = vld [vmem:[#allocation7] sm:$0x3]  ;;  %s260_s21 = sshll.u32 %s381_s2, 4  ;;  %s261_s21 = int_to_ptr.vmem [resolvable:$true] %s260_s21 }
  0x38   :  { %s346_s22 = scalar_lea.vmem %s261_s21, 128  ;;  %p351_p11 = scmp.lt.s32.totalorder %s261_s21, %s261_s21 }
  0x39   :  { %vm65_vm0 = vcmp.lt.s32.totalorder %v57_v4, 127  ;;  %vm58_vm1 = vcmp.lt.s32.totalorder %v57_v4, 112  ;;  %v226_v23 = vsub.s32 0, %v225_v22  ;;  %v230_v26 = vsub.s32 1, %v225_v22  ;;  %p347_p10 = scmp.ne.s32.totalorder %s261_s21, %s346_s22  ;;  %p352_p12 = scmp.lt.s32.totalorder %s346_s22, %s346_s22 }
  0x3b   :  { %63 = vrot.lane.b32.xlu1 %v51_v2, %s378_s19  ;;  %54 = vrot.lane.b32.xlu0 %v51_v2, %s379_s20  ;;  %v227_v27 = vrot.slane %v222_v24, %v226_v23  ;;  %v241_v28 = vrot.slane %v236_v25, %v226_v23  ;;  %v231_v29 = vrot.slane %v222_v24, %v230_v26  ;;  %p353_p13 = por %p352_p12, %p351_p11 }
  0x3c   :  { %v245_v30 = vrot.slane %v236_v25, %v230_v26 }
  0x3d   :  { %p354_p0 = pnand %p353_p13, %p347_p10 }
  0xa9   :  { %v62_v5 = vpop.permute.xlu1 %61  ;;  %v53_v6 = vpop.permute.xlu0 %52 }
  0xad   :  { %v64_v7 = vpop.permute.xlu1 %63  ;;  %v55_v8 = vpop.permute.xlu0 %54 }
  0xae   :  { %v66_v9 = vsel %vm65_vm0, %v62_v5, %v64_v7  ;;  %v59_v10 = vsel %vm58_vm1, %v53_v6, %v55_v8  ;;  %v60_v11 = vsel %vm58_vm1, %v55_v8, %v53_v6  ;;  %v67_v12 = vsel %vm65_vm0, %v64_v7, %v62_v5 }
  0xaf   :  { %v69_v13 = vsub.f32 %v60_v11, %v51_v2  ;;  %v71_v14 = vsub.f32 %v67_v12, %v51_v2  ;;  %v68_v15 = vsub.f32 %v59_v10, %v50_v1  ;;  %v70_v16 = vsub.f32 %v66_v9, %v50_v1 }
  0xb1   :  { %v73_v17 = vmul.f32 %v69_v13, %v69_v13  ;;  %v75_v18 = vmul.f32 %v71_v14, %v71_v14  ;;  %v72_v19 = vmul.f32 %v68_v15, %v68_v15  ;;  %v74_v20 = vmul.f32 %v70_v16, %v70_v16 }
  0xb3   :  { %80 = vmatprep.subr.mxu0 %v73_v17  ;;  %151 = vmatprep.subr.mxu1 %v75_v18 }
  0xb4   :  { %81 = vmatpush1.msra.mxu0 %v72_v19  ;;  %152 = vmatpush1.msra.mxu1 %v74_v20 }
  0xb5   :  { %270 = vmatmul.mubr.msk.f32.vlgmr.msra.gmra.mrb[0].mxu0 %vm76_vm2, %v380_v21  ;;  %271 = vmatmul.mubr.msk.f32.vlgmr.msra.gmra.mrb[0].mxu1 %vm76_vm2, %v380_v21 }
 0x188   :  { %v146_v31 = vpop.f32.mrb[0].mxu0  ;;  %v217_v32 = vpop.f32.mrb[0].mxu1 }
 0x189   :  { %v234_v33 = vmul.f32 %v227_v27, %v146_v31  ;;  %v248_v34 = vmul.f32 %v241_v28, %v217_v32  ;;  %v148_v35 = vpop.f32.mrb[1].mxu0  ;;  %v219_v36 = vpop.f32.mrb[1].mxu1 }
 0x18a   :  { %v235_v37 = vmul.f32 %v231_v29, %v148_v35  ;;  %v249_v38 = vmul.f32 %v245_v30, %v219_v36 }
 0x18b   :  { %v250_v39 = vadd.f32 %v248_v34, %v234_v33 }
 0x18c   :  { %v251_v40 = vadd.f32 %v249_v38, %v235_v37 }
 0x18e   :  { %v252_v41 = vadd.f32 %v251_v40, %v250_v39 }
 0x190   :  { %253 = vst [vmem:[#allocation8] sm:$0xff] %v252_v41 }
 0x191   :  { %357 = shalt.err (!%p354_p0)
}
 0x192   :  { %s358_s25 = scalar_lea.hbm %s453_s3, 128 }
 0x193   :  { %p359_p1 = scmp.ne.s32.totalorder %s453_s3, %s358_s25  ;;  %p362_p2 = scmp.lt.u32.totalorder %s358_s25, %s453_s3 }
 0x195   :  { %p364_p3 = pnand %p362_p2, %p359_p1 }
 0x197   :  { %367 = shalt.err (!%p364_p3)
}
 0x198   :  { %263 = dma.vmem_to_hbm [thread:$0]  %s261_s21, 128, %s453_s3, [#allocation4]  }
 0x199   :  { %372 = dma.done.wait [#allocation4], 128  }
 0x19a   :  { %373 = vsyncadd [#allocation4], 4294967168 }
 0x19b   :  { %267 = vsyncpa [#allocation3], 1 }
 0x19c   :  { %268 = vsyncpa [#allocation6], 1 }
 0x19d   :  { %269 = vsyncpa [#allocation4], 1 }

</bundles_post_ra>
